<compile_context>
chip_gen: v6e
topology: v6e:2x2x1
jax: 0.10.0
libtpu: 0.0.40
codegen_flags: <defaults>
</compile_context>

<pallas_src>
import jax
import jax.numpy as jnp
from jax import lax
from jax.experimental import pallas as pl
from jax.experimental.pallas import tpu as pltpu

D_IN = 28 * 28
HID_PAD = 128      # hidden width padded 64 -> 128 (lane-dense)
OUT_PAD = 128      # logits padded 10 -> 128 (lane-dense stores)
N_OUT = 10
TILE_M_MAX = 1024  # batch tile cap (HBM-roofline knee; sweep 512/1024/2048)


def _round_up(n, m):
    return ((n + m - 1) // m) * m


def _pick_tile(b_pad):
    """Adaptive batch tile: large enough to amortize per-step pipeline overhead,
    small enough that small batches don't pad to hundreds of zero rows, and
    giving >=2 grid tiles when possible so v7x can shard over both TensorCores.
    Always a multiple of 16 (bf16 sublane minimum)."""
    t = min(TILE_M_MAX, b_pad)
    if b_pad > 16:
        t = min(t, _round_up(pl.cdiv(b_pad, 2), 16))
    return max(16, t)


def mlp_kernel(x_ref, w1_ref, b1_ref, w2_ref, b2_ref, w3_ref, b3_ref,
               w4_ref, b4_ref, o_ref):
    # Cast activations to bf16 in-kernel (x arrives in its original HBM dtype,
    # so there is no extra wrapper-side copy of the dominant HBM stream).
    x = x_ref[...].astype(jnp.bfloat16)
    # fc1..fc3: bf16 matmul operands, f32 accumulation, f32 bias + ReLU
    h = jnp.dot(x, w1_ref[...], preferred_element_type=jnp.float32)
    h = jnp.maximum(h + b1_ref[...], 0.0).astype(jnp.bfloat16)
    h = jnp.dot(h, w2_ref[...], preferred_element_type=jnp.float32)
    h = jnp.maximum(h + b2_ref[...], 0.0).astype(jnp.bfloat16)
    h = jnp.dot(h, w3_ref[...], preferred_element_type=jnp.float32)
    h = jnp.maximum(h + b3_ref[...], 0.0).astype(jnp.bfloat16)
    # fc4
    logits = jnp.dot(h, w4_ref[...], preferred_element_type=jnp.float32) + b4_ref[...]
    # log_softmax over the first N_OUT lanes only (padded lanes excluded from the
    # reduction); padded lanes are written as 0.0, not -inf.
    col = lax.broadcasted_iota(jnp.int32, logits.shape, 1)
    valid = col < N_OUT
    masked = jnp.where(valid, logits, -jnp.inf)
    m = jnp.max(masked, axis=-1, keepdims=True)
    shifted = masked - m
    lse = jnp.log(jnp.sum(jnp.exp(shifted), axis=-1, keepdims=True))
    o_ref[...] = jnp.where(valid, shifted - lse, 0.0).astype(o_ref.dtype)


def prepare_params(params):
    """One-time pad (64->128 hidden, 10->128 logits) + bf16 cast of the Linear
    params.  Call once and reuse; keeps the per-forward path free of the 8 tiny
    pad/cast XLA ops."""
    def pad_w(w, rows, cols):
        out = jnp.zeros((rows, cols), jnp.bfloat16)
        return out.at[:w.shape[0], :w.shape[1]].set(w.astype(jnp.bfloat16))

    def pad_b(b, cols):
        out = jnp.zeros((1, cols), jnp.float32)
        return out.at[:, :b.shape[1]].set(b.astype(jnp.float32))

    (w1, b1), (w2, b2), (w3, b3), (w4, b4) = params
    return (pad_w(w1, D_IN, HID_PAD), pad_b(b1, HID_PAD),
            pad_w(w2, HID_PAD, HID_PAD), pad_b(b2, HID_PAD),
            pad_w(w3, HID_PAD, HID_PAD), pad_b(b3, HID_PAD),
            pad_w(w4, HID_PAD, OUT_PAD), pad_b(b4, OUT_PAD))


def mlp_forward(x, prepared_params):
    w1p, b1p, w2p, b2p, w3p, b3p, w4p, b4p = prepared_params
    B, d_in = x.shape
    assert d_in == D_IN, f"expected {D_IN} input features, got {d_in}"

    # Only pad rows when B is not 16-aligned (tiny pad, no dtype change); for
    # aligned batches x goes straight into the kernel with zero extra copies.
    b_pad = _round_up(B, 16)
    x_p = x if b_pad == B else jnp.pad(x, ((0, b_pad - B), (0, 0)))

    tile_m = _pick_tile(b_pad)
    grid_m = pl.cdiv(b_pad, tile_m)   # partial last tile OK (OOB rows masked on store)

    resident = lambda shape: pl.BlockSpec(shape, lambda i: (0, 0))

    weight_bytes = sum(int(a.size) * a.dtype.itemsize
                       for a in (w1p, b1p, w2p, b2p, w3p, b3p, w4p, b4p))
    cost = pl.CostEstimate(
        flops=2 * b_pad * (d_in * HID_PAD + 2 * HID_PAD * HID_PAD + HID_PAD * OUT_PAD),
        transcendentals=b_pad * OUT_PAD,
        bytes_accessed=weight_bytes
                       + int(x_p.size) * x_p.dtype.itemsize
                       + b_pad * OUT_PAD * 4,
    )

    out = pl.pallas_call(
        mlp_kernel,
        out_shape=jax.ShapeDtypeStruct((b_pad, OUT_PAD), jnp.float32),
        grid_spec=pltpu.PrefetchScalarGridSpec(
            num_scalar_prefetch=0,
            grid=(grid_m,),
            in_specs=[
                pl.BlockSpec((tile_m, d_in), lambda i: (i, 0)),
                resident((d_in, HID_PAD)), resident((1, HID_PAD)),
                resident((HID_PAD, HID_PAD)), resident((1, HID_PAD)),
                resident((HID_PAD, HID_PAD)), resident((1, HID_PAD)),
                resident((HID_PAD, OUT_PAD)), resident((1, OUT_PAD)),
            ],
            out_specs=pl.BlockSpec((tile_m, OUT_PAD), lambda i: (i, 0)),
        ),
        compiler_params=pltpu.CompilerParams(
            dimension_semantics=("parallel",),   # batch tiles shard over TCs (v7x)
            vmem_limit_bytes=32 * 1024 * 1024,   # above v5e's 16 MiB scoped default
        ),
        cost_estimate=cost,
    )(x_p, w1p, b1p, w2p, b2p, w3p, b3p, w4p, b4p)

    return out[:B, :N_OUT]


def init_params(key):
    """Deterministic init mimicking nn.Linear shapes (weights stored as (in, out))."""
    dims = [(D_IN, 64), (64, 64), (64, 64), (64, N_OUT)]
    params = []
    for i, (din, dout) in enumerate(dims):
        kw, kb = jax.random.split(jax.random.fold_in(key, i))
        bound = 1.0 / jnp.sqrt(din)
        w = jax.random.uniform(kw, (din, dout), jnp.float32, -bound, bound)
        b = jax.random.uniform(kb, (1, dout), jnp.float32, -bound, bound)
        params.append((w, b))
    return params


def reference_forward(x, params):
    """Matches the kernel's numerics: bf16 matmul operands, f32 accumulation."""
    h = x
    for i, (w, b) in enumerate(params):
        h = jnp.dot(h.astype(jnp.bfloat16), w.astype(jnp.bfloat16),
                    preferred_element_type=jnp.float32) + b
        if i < 3:
            h = jnp.maximum(h, 0.0)
    return jax.nn.log_softmax(h, axis=1)


if __name__ == "__main__":
    key = jax.random.PRNGKey(0)
    kx, kp = jax.random.split(key)
    B = 8
    x = jax.random.normal(kx, (B, D_IN), jnp.float32)
    params = init_params(kp)
    prepared = prepare_params(params)   # one-time pad/cast, reused every call

    out = jax.block_until_ready(mlp_forward(x, prepared))
    ref = reference_forward(x, params)

    assert out.shape == (B, N_OUT)
    assert bool(jnp.all(jnp.isfinite(out))), "non-finite output"
    assert jnp.allclose(out, ref, atol=1e-3, rtol=1e-3), "mismatch vs reference"
    print("KERNEL_OK")
</pallas_src>

<mosaic_0001>
module attributes {stable_mosaic.version = 11 : i64} {
  func.func @mlp_kernel(%arg0: i32, %arg1: memref<16x784xf32, #tpu.memory_space<vmem>>, %arg2: memref<784x128xbf16, #tpu.memory_space<vmem>>, %arg3: memref<1x128xf32, #tpu.memory_space<vmem>>, %arg4: memref<128x128xbf16, #tpu.memory_space<vmem>>, %arg5: memref<1x128xf32, #tpu.memory_space<vmem>>, %arg6: memref<128x128xbf16, #tpu.memory_space<vmem>>, %arg7: memref<1x128xf32, #tpu.memory_space<vmem>>, %arg8: memref<128x128xbf16, #tpu.memory_space<vmem>>, %arg9: memref<1x128xf32, #tpu.memory_space<vmem>>, %arg10: memref<16x128xf32, #tpu.memory_space<vmem>>) attributes {dimension_semantics = [#tpu.dimension_semantics<parallel>], iteration_bounds = array<i64: 1>, scalar_prefetch = 0 : i64, scratch_operands = 0 : i64, tpu.core_type = #tpu.core_type<tc>, window_params = [{transform_indices = @transform_0, window_bounds = array<i64: 16, 784>}, {pipeline_mode = #tpu.pipeline_mode<synchronous>, transform_indices = @transform_1, window_bounds = array<i64: 784, 128>}, {pipeline_mode = #tpu.pipeline_mode<synchronous>, transform_indices = @transform_2, window_bounds = array<i64: 1, 128>}, {pipeline_mode = #tpu.pipeline_mode<synchronous>, transform_indices = @transform_3, window_bounds = array<i64: 128, 128>}, {pipeline_mode = #tpu.pipeline_mode<synchronous>, transform_indices = @transform_4, window_bounds = array<i64: 1, 128>}, {pipeline_mode = #tpu.pipeline_mode<synchronous>, transform_indices = @transform_5, window_bounds = array<i64: 128, 128>}, {pipeline_mode = #tpu.pipeline_mode<synchronous>, transform_indices = @transform_6, window_bounds = array<i64: 1, 128>}, {pipeline_mode = #tpu.pipeline_mode<synchronous>, transform_indices = @transform_7, window_bounds = array<i64: 128, 128>}, {pipeline_mode = #tpu.pipeline_mode<synchronous>, transform_indices = @transform_8, window_bounds = array<i64: 1, 128>}, {transform_indices = @transform_9, window_bounds = array<i64: 16, 128>}]} {
    %c0 = arith.constant 0 : index
    %c0_0 = arith.constant 0 : index
    %0 = vector.load %arg1[%c0, %c0_0] : memref<16x784xf32, #tpu.memory_space<vmem>>, vector<16x784xf32>
    %1 = arith.truncf %0 : vector<16x784xf32> to vector<16x784xbf16>
    %c0_1 = arith.constant 0 : index
    %c0_2 = arith.constant 0 : index
    %2 = vector.load %arg2[%c0_1, %c0_2] : memref<784x128xbf16, #tpu.memory_space<vmem>>, vector<784x128xbf16>
    %cst = arith.constant dense<0.000000e+00> : vector<16x128xf32>
    %3 = tpu.matmul %1, %2, %cst {dimension_numbers = #tpu.dot_dimension_numbers<[1], [0], [0], [1], [0, 0, 1, 1], [], []>} : vector<16x784xbf16>, vector<784x128xbf16>, vector<16x128xf32> -> vector<16x128xf32>
    %c0_3 = arith.constant 0 : index
    %c0_4 = arith.constant 0 : index
    %4 = vector.load %arg3[%c0_3, %c0_4] : memref<1x128xf32, #tpu.memory_space<vmem>>, vector<1x128xf32>
    %5 = vector.broadcast %4 : vector<1x128xf32> to vector<16x128xf32>
    %6 = arith.addf %3, %5 : vector<16x128xf32>
    %cst_5 = arith.constant 0.000000e+00 : f32
    %7 = vector.broadcast %cst_5 : f32 to vector<16x128xf32>
    %8 = arith.maximumf %6, %7 : vector<16x128xf32>
    %9 = arith.truncf %8 : vector<16x128xf32> to vector<16x128xbf16>
    %c0_6 = arith.constant 0 : index
    %c0_7 = arith.constant 0 : index
    %10 = vector.load %arg4[%c0_6, %c0_7] : memref<128x128xbf16, #tpu.memory_space<vmem>>, vector<128x128xbf16>
    %cst_8 = arith.constant dense<0.000000e+00> : vector<16x128xf32>
    %11 = tpu.matmul %9, %10, %cst_8 {dimension_numbers = #tpu.dot_dimension_numbers<[1], [0], [0], [1], [0, 0, 1, 1], [], []>} : vector<16x128xbf16>, vector<128x128xbf16>, vector<16x128xf32> -> vector<16x128xf32>
    %c0_9 = arith.constant 0 : index
    %c0_10 = arith.constant 0 : index
    %12 = vector.load %arg5[%c0_9, %c0_10] : memref<1x128xf32, #tpu.memory_space<vmem>>, vector<1x128xf32>
    %13 = vector.broadcast %12 : vector<1x128xf32> to vector<16x128xf32>
    %14 = arith.addf %11, %13 : vector<16x128xf32>
    %cst_11 = arith.constant 0.000000e+00 : f32
    %15 = vector.broadcast %cst_11 : f32 to vector<16x128xf32>
    %16 = arith.maximumf %14, %15 : vector<16x128xf32>
    %17 = arith.truncf %16 : vector<16x128xf32> to vector<16x128xbf16>
    %c0_12 = arith.constant 0 : index
    %c0_13 = arith.constant 0 : index
    %18 = vector.load %arg6[%c0_12, %c0_13] : memref<128x128xbf16, #tpu.memory_space<vmem>>, vector<128x128xbf16>
    %cst_14 = arith.constant dense<0.000000e+00> : vector<16x128xf32>
    %19 = tpu.matmul %17, %18, %cst_14 {dimension_numbers = #tpu.dot_dimension_numbers<[1], [0], [0], [1], [0, 0, 1, 1], [], []>} : vector<16x128xbf16>, vector<128x128xbf16>, vector<16x128xf32> -> vector<16x128xf32>
    %c0_15 = arith.constant 0 : index
    %c0_16 = arith.constant 0 : index
    %20 = vector.load %arg7[%c0_15, %c0_16] : memref<1x128xf32, #tpu.memory_space<vmem>>, vector<1x128xf32>
    %21 = vector.broadcast %20 : vector<1x128xf32> to vector<16x128xf32>
    %22 = arith.addf %19, %21 : vector<16x128xf32>
    %cst_17 = arith.constant 0.000000e+00 : f32
    %23 = vector.broadcast %cst_17 : f32 to vector<16x128xf32>
    %24 = arith.maximumf %22, %23 : vector<16x128xf32>
    %25 = arith.truncf %24 : vector<16x128xf32> to vector<16x128xbf16>
    %c0_18 = arith.constant 0 : index
    %c0_19 = arith.constant 0 : index
    %26 = vector.load %arg8[%c0_18, %c0_19] : memref<128x128xbf16, #tpu.memory_space<vmem>>, vector<128x128xbf16>
    %cst_20 = arith.constant dense<0.000000e+00> : vector<16x128xf32>
    %27 = tpu.matmul %25, %26, %cst_20 {dimension_numbers = #tpu.dot_dimension_numbers<[1], [0], [0], [1], [0, 0, 1, 1], [], []>} : vector<16x128xbf16>, vector<128x128xbf16>, vector<16x128xf32> -> vector<16x128xf32>
    %c0_21 = arith.constant 0 : index
    %c0_22 = arith.constant 0 : index
    %28 = vector.load %arg9[%c0_21, %c0_22] : memref<1x128xf32, #tpu.memory_space<vmem>>, vector<1x128xf32>
    %29 = vector.broadcast %28 : vector<1x128xf32> to vector<16x128xf32>
    %30 = arith.addf %27, %29 : vector<16x128xf32>
    %31 = tpu.iota {dimensions = array<i32: 1>} : vector<16x128xi32>
    %c10_i32 = arith.constant 10 : i32
    %32 = vector.broadcast %c10_i32 : i32 to vector<16x128xi32>
    %33 = arith.cmpi slt, %31, %32 : vector<16x128xi32>
    %cst_23 = arith.constant 0xFF800000 : f32
    %34 = vector.broadcast %cst_23 : f32 to vector<16x128xf32>
    %35 = arith.select %33, %30, %34 : vector<16x128xi1>, vector<16x128xf32>
    %cst_24 = arith.constant dense<0xFF800000> : vector<16xf32>
    %36 = vector.multi_reduction <maximumf>, %35, %cst_24 [1] : vector<16x128xf32> to vector<16xf32>
    %37 = vector.shape_cast %36 : vector<16xf32> to vector<16x1xf32>
    %38 = vector.broadcast %37 : vector<16x1xf32> to vector<16x128xf32>
    %39 = arith.subf %35, %38 : vector<16x128xf32>
    %40 = math.exp %39 : vector<16x128xf32>
    %cst_25 = arith.constant dense<0.000000e+00> : vector<16xf32>
    %41 = vector.multi_reduction <add>, %40, %cst_25 [1] : vector<16x128xf32> to vector<16xf32>
    %42 = vector.shape_cast %41 : vector<16xf32> to vector<16x1xf32>
    %43 = math.log %42 : vector<16x1xf32>
    %44 = vector.broadcast %43 : vector<16x1xf32> to vector<16x128xf32>
    %45 = arith.subf %39, %44 : vector<16x128xf32>
    %cst_26 = arith.constant 0.000000e+00 : f32
    %46 = vector.broadcast %cst_26 : f32 to vector<16x128xf32>
    %47 = arith.select %33, %45, %46 : vector<16x128xi1>, vector<16x128xf32>
    %c0_27 = arith.constant 0 : index
    %c0_28 = arith.constant 0 : index
    %48 = vector.load %arg10[%c0_27, %c0_28] : memref<16x128xf32, #tpu.memory_space<vmem>>, vector<16x128xf32>
    tpu.vector_store %arg10[%c0_27, %c0_28], %47 {strides = array<i32>} : memref<16x128xf32, #tpu.memory_space<vmem>>, vector<16x128xf32>,
    return
  }
  func.func @transform_0(%arg0: i32) -> (i32, i32) {
    %c0_i32 = arith.constant 0 : i32
    %c0_i32_0 = arith.constant 0 : i32
    return %arg0, %c0_i32 : i32, i32
  }
  func.func @transform_1(%arg0: i32) -> (i32, i32) {
    %c0_i32 = arith.constant 0 : i32
    %c0_i32_0 = arith.constant 0 : i32
    %c0_i32_1 = arith.constant 0 : i32
    return %c0_i32, %c0_i32_0 : i32, i32
  }
  func.func @transform_2(%arg0: i32) -> (i32, i32) {
    %c0_i32 = arith.constant 0 : i32
    %c0_i32_0 = arith.constant 0 : i32
    %c0_i32_1 = arith.constant 0 : i32
    return %c0_i32, %c0_i32_0 : i32, i32
  }
  func.func @transform_3(%arg0: i32) -> (i32, i32) {
    %c0_i32 = arith.constant 0 : i32
    %c0_i32_0 = arith.constant 0 : i32
    %c0_i32_1 = arith.constant 0 : i32
    return %c0_i32, %c0_i32_0 : i32, i32
  }
  func.func @transform_4(%arg0: i32) -> (i32, i32) {
    %c0_i32 = arith.constant 0 : i32
    %c0_i32_0 = arith.constant 0 : i32
    %c0_i32_1 = arith.constant 0 : i32
    return %c0_i32, %c0_i32_0 : i32, i32
  }
  func.func @transform_5(%arg0: i32) -> (i32, i32) {
    %c0_i32 = arith.constant 0 : i32
    %c0_i32_0 = arith.constant 0 : i32
    %c0_i32_1 = arith.constant 0 : i32
    return %c0_i32, %c0_i32_0 : i32, i32
  }
  func.func @transform_6(%arg0: i32) -> (i32, i32) {
    %c0_i32 = arith.constant 0 : i32
    %c0_i32_0 = arith.constant 0 : i32
    %c0_i32_1 = arith.constant 0 : i32
    return %c0_i32, %c0_i32_0 : i32, i32
  }
  func.func @transform_7(%arg0: i32) -> (i32, i32) {
    %c0_i32 = arith.constant 0 : i32
    %c0_i32_0 = arith.constant 0 : i32
    %c0_i32_1 = arith.constant 0 : i32
    return %c0_i32, %c0_i32_0 : i32, i32
  }
  func.func @transform_8(%arg0: i32) -> (i32, i32) {
    %c0_i32 = arith.constant 0 : i32
    %c0_i32_0 = arith.constant 0 : i32
    %c0_i32_1 = arith.constant 0 : i32
    return %c0_i32, %c0_i32_0 : i32, i32
  }
  func.func @transform_9(%arg0: i32) -> (i32, i32) {
    %c0_i32 = arith.constant 0 : i32
    %c0_i32_0 = arith.constant 0 : i32
    return %arg0, %c0_i32 : i32, i32
  }
}

</mosaic_0001>

<bundles_post_ra>
// kernel: tpu_custom_call.1
= control target key start
LH: loop header
LB: loop body
LE: loop exit
PB: predicated region body
PF: predicated region fallthrough
CT: control target
= control target key end

     0   :  { %14 = vsyncpa [#allocation3], 0  ;;  %s1688_s0 = inlined_call_operand.hbm [shape: f32[16,784], index: 0, kind: input, shape index: {}]   ;;  %s1689_s1 = inlined_call_operand.hbm [shape: bf16[784,128], index: 1, kind: input, shape index: {}]   ;;  %s1690_s2 = inlined_call_operand.vmem [shape: f32[1,128], index: 2, kind: input, shape index: {}]   ;;  %s1691_s3 = inlined_call_operand.hbm [shape: bf16[128,128], index: 3, kind: input, shape index: {}]   ;;  %s1692_s4 = inlined_call_operand.vmem [shape: f32[1,128], index: 4, kind: input, shape index: {}]   ;;  %s1693_s5 = inlined_call_operand.hbm [shape: bf16[128,128], index: 5, kind: input, shape index: {}]   ;;  %s1694_s6 = inlined_call_operand.vmem [shape: f32[1,128], index: 6, kind: input, shape index: {}]   ;;  %s1695_s7 = inlined_call_operand.hbm [shape: bf16[128,128], index: 7, kind: input, shape index: {}]   ;;  %s1696_s8 = inlined_call_operand.vmem [shape: f32[1,128], index: 8, kind: input, shape index: {}]   ;;  %s1697_s9 = inlined_call_operand.hbm [shape: f32[16,128], index: 9, kind: output, shape index: {}]  }
   0x1   :  { %15 = vsyncpa [#allocation6], 0 }
   0x2   :  { %16 = vsyncpa [#allocation9], 0 }
   0x3   :  { %17 = vsyncpa [#allocation4], 0  ;;  %s1545_s30 = smov [#allocation5]  }
   0x4   :  { %s35_s10 = sshll.u32 %s1545_s30, 4  ;;  %s36_s10 = int_to_ptr.vmem [resolvable:$true] %s35_s10 }
   0x5   :  { %s1425_s11 = scalar_lea.vmem %s36_s10, 6272  ;;  %p1430_p1 = scmp.lt.s32.totalorder %s36_s10, %s36_s10 }
   0x6   :  { %p1426_p0 = scmp.ne.s32.totalorder %s36_s10, %s1425_s11  ;;  %p1431_p2 = scmp.lt.s32.totalorder %s1425_s11, %s1425_s11 }
   0x8   :  { %p1432_p3 = por %p1431_p2, %p1430_p1 }
   0xa   :  { %p1433_p4 = pnand %p1432_p3, %p1426_p0 }
   0xc   :  { %1436 = shalt.err (!%p1433_p4)
}
   0xd   :  { %s1546_s12 = smov 64   ;;  %s1547_s13 = smov 4  }
   0xe   :  { %41 = dma.hbm_to_vmem [thread:$0]  %s1689_s1, 6272, %s36_s10, [#allocation6], %s1546_s12, %s1546_s12, %s1547_s13  }
   0xf   :  { %s1548_s16 = smov [#allocation8]   ;;  %s1549_s18 = smov [#allocation2]  }
  0x10   :  { %s63_s17 = sshll.u32 %s1548_s16, 4  ;;  %s23_s19 = sshll.u32 %s1549_s18, 4  ;;  %s64_s17 = int_to_ptr.vmem [resolvable:$true] %s63_s17  ;;  %s24_s19 = int_to_ptr.vmem [resolvable:$true] %s23_s19 }
  0x11   :  { %s1445_s20 = scalar_lea.vmem %s64_s17, 1024  ;;  %p1450_p6 = scmp.lt.s32.totalorder %s64_s17, %s64_s17 }
  0x12   :  { %p1446_p5 = scmp.ne.s32.totalorder %s64_s17, %s1445_s20  ;;  %p1451_p7 = scmp.lt.s32.totalorder %s1445_s20, %s1445_s20 }
  0x14   :  { %p1452_p8 = por %p1451_p7, %p1450_p6 }
  0x16   :  { %p1453_p9 = pnand %p1452_p8, %p1446_p5 }
  0x18   :  { %1456 = shalt.err (!%p1453_p9)
}
  0x19   :  { %69 = dma.hbm_to_vmem [thread:$0]  %s1693_s5, 1024, %s64_s17, [#allocation9], %s1546_s12, %s1546_s12, %s1547_s13  }
  0x1a   :  { %s1465_s1 = scalar_lea.vmem %s24_s19, 1792  ;;  %p1470_p11 = scmp.lt.s32.totalorder %s24_s19, %s24_s19 }
  0x1b   :  { %p1466_p10 = scmp.ne.s32.totalorder %s24_s19, %s1465_s1  ;;  %p1471_p12 = scmp.lt.s32.totalorder %s1465_s1, %s1465_s1 }
  0x1d   :  { %p1472_p13 = por %p1471_p12, %p1470_p11 }
  0x1f   :  { %p1473_p0 = pnand %p1472_p13, %p1466_p10 }
  0x21   :  { %1476 = shalt.err (!%p1473_p0)
}
  0x22   :  { %s1550_s23 = smov 896   ;;  %s1551_s24 = smov 56  }
  0x23   :  { %29 = dma.hbm_to_vmem [thread:$0]  %s1688_s0, 1792, %s24_s19, [#allocation3], %s1550_s23, %s1550_s23, %s1551_s24  }
  0x24   :  { %s1552_s27 = smov [#allocation7]   ;;  %s1553_s29 = smov [#allocation10]  }
  0x25   :  { %s49_s28 = sshll.u32 %s1552_s27, 4  ;;  %s77_s30 = sshll.u32 %s1553_s29, 4  ;;  %s50_s28 = int_to_ptr.vmem [resolvable:$true] %s49_s28  ;;  %s78_s30 = int_to_ptr.vmem [resolvable:$true] %s77_s30 }
  0x26   :  { %s1485_s5 = scalar_lea.vmem %s50_s28, 1024  ;;  %p1490_p2 = scmp.lt.s32.totalorder %s50_s28, %s50_s28 }
  0x27   :  { %p1486_p1 = scmp.ne.s32.totalorder %s50_s28, %s1485_s5  ;;  %p1491_p3 = scmp.lt.s32.totalorder %s1485_s5, %s1485_s5 }
  0x29   :  { %p1492_p4 = por %p1491_p3, %p1490_p2 }
  0x2b   :  { %p1493_p5 = pnand %p1492_p4, %p1486_p1 }
  0x2d   :  { %1496 = shalt.err (!%p1493_p5)
}
  0x2e   :  { %55 = dma.hbm_to_vmem [thread:$0]  %s1691_s3, 1024, %s50_s28, [#allocation6], %s1546_s12, %s1546_s12, %s1547_s13  }
  0x2f   :  { %s1505_s0 = scalar_lea.vmem %s78_s30, 1024  ;;  %p1510_p7 = scmp.lt.s32.totalorder %s78_s30, %s78_s30 }
  0x30   :  { %p1506_p6 = scmp.ne.s32.totalorder %s78_s30, %s1505_s0  ;;  %p1511_p8 = scmp.lt.s32.totalorder %s1505_s0, %s1505_s0 }
  0x32   :  { %p1512_p9 = por %p1511_p8, %p1510_p7 }
  0x34   :  { %p1513_p10 = pnand %p1512_p9, %p1506_p6 }
  0x36   :  { %1516 = shalt.err (!%p1513_p10)
}
  0x37   :  { %83 = dma.hbm_to_vmem [thread:$0]  %s1695_s7, 1024, %s78_s30, [#allocation9], %s1546_s12, %s1546_s12, %s1547_s13  }
  0x38   :  { %1537 = dma.done.wait [#allocation3], 1792  }
  0x39   :  { %1538 = vsyncadd [#allocation3], 4294965504 }
  0x3a   :  { %1539 = dma.done.wait [#allocation6], 7296  }
  0x3b   :  { %1540 = vsyncadd [#allocation6], 4294960000 }
  0x3c   :  { %1541 = dma.done.wait [#allocation9], 2048  }
  0x3d   :  { %1542 = vsyncadd [#allocation9], 4294965248  ;;  %v1336_v0 = vld [vmem:[#allocation5 + $0x78] sm:$0xff]   ;;  %v1340_v4 = vld [vmem:[#allocation5 + $0x70] sm:$0xff]   ;;  %v1554_v43 = vmov 0.0   ;;  %vm1555_vm0 = vmmov 0  }
  0x3e   :  { %v1337_v1 = vld [vmem:[#allocation5 + $0x38] sm:$0xff]   ;;  %1161 = vmatprep.subr.bf16.mxu0 %v1336_v0  ;;  %v1341_v5 = vld [vmem:[#allocation5 + $0x30] sm:$0xff]   ;;  %v1344_v8 = vld [vmem:[#allocation5 + $0x68] sm:$0xff]   ;;  %vm522_vm1 = vcmask 130048  }
  0x3f   :  { %v1338_v2 = vld [vmem:[#allocation5 + $0xf8] sm:$0xff]   ;;  %1162 = vmatpush3.bf16.msra.mxu0 %v1337_v1  ;;  %v1342_v6 = vld [vmem:[#allocation5 + $0xf0] sm:$0xff]   ;;  %v1345_v9 = vld [vmem:[#allocation5 + $0x28] sm:$0xff]  }
  0x40   :  { %v1339_v3 = vld [vmem:[#allocation5 + $0xb8] sm:$0xff]   ;;  %1183 = vmatprep.subr.bf16.mxu1 %v1338_v2  ;;  %1163 = vmatprep.subr.bf16.mxu0 %v1340_v4  ;;  %v1343_v7 = vld [vmem:[#allocation5 + $0xb0] sm:$0xff]   ;;  %v1346_v10 = vld [vmem:[#allocation5 + $0xe8] sm:$0xff]  }
  0x41   :  { %1184 = vmatpush3.bf16.msra.mxu1 %v1339_v3  ;;  %v1347_v11 = vld [vmem:[#allocation5 + $0xa8] sm:$0xff]   ;;  %v1348_v12 = vld [vmem:[#allocation5 + $0x60] sm:$0xff]   ;;  %v1352_v16 = vld [vmem:[#allocation5 + $0x58] sm:$0xff]  }
  0x42   :  { %1185 = vmatprep.subr.bf16.mxu1 %v1342_v6  ;;  %v1349_v13 = vld [vmem:[#allocation5 + $0x20] sm:$0xff]   ;;  %v1353_v17 = vld [vmem:[#allocation5 + $0x18] sm:$0xff]   ;;  %v1356_v20 = vld [vmem:[#allocation5 + $0x50] sm:$0xff]  }
  0x43   :  { %1164 = vmatpush3.bf16.msra.mxu0 %v1341_v5  ;;  %v1350_v14 = vld [vmem:[#allocation5 + $0xe0] sm:$0xff]   ;;  %v1354_v18 = vld [vmem:[#allocation5 + $0xd8] sm:$0xff]   ;;  %v1357_v21 = vld [vmem:[#allocation5 + $0x10] sm:$0xff]  }
  0x44   :  { %1165 = vmatprep.subr.bf16.mxu0 %v1344_v8  ;;  %v1351_v15 = vld [vmem:[#allocation5 + $0xa0] sm:$0xff]   ;;  %v1355_v19 = vld [vmem:[#allocation5 + $0x98] sm:$0xff]   ;;  %v1358_v22 = vld [vmem:[#allocation5 + $0xd0] sm:$0xff]  }
  0x45   :  { %1186 = vmatpush3.bf16.msra.mxu1 %v1343_v7  ;;  %v1359_v23 = vld [vmem:[#allocation5 + $0x90] sm:$0xff]   ;;  %v1360_v24 = vld [vmem:[#allocation5 + $0x48] sm:$0xff]   ;;  %v1364_v28 = vld [vmem:[#allocation5 + $0x40] sm:$0xff]  }
  0x46   :  { %1187 = vmatprep.subr.bf16.mxu1 %v1346_v10  ;;  %v1361_v25 = vld [vmem:[#allocation5 + $0x8] sm:$0xff]   ;;  %v1365_v29 = vld [vmem:[#allocation5] sm:$0xff]   ;;  %v103_v31 = vld [vmem:[#allocation2 + $0x8] sm:$0xff] }
  0x47   :  { %1166 = vmatpush3.bf16.msra.mxu0 %v1345_v9  ;;  %v1362_v26 = vld [vmem:[#allocation5 + $0xc8] sm:$0xff]   ;;  %v1366_v30 = vld [vmem:[#allocation5 + $0xc0] sm:$0xff]   ;;  %v110_v32 = vld [vmem:[#allocation2 + $0x40] sm:$0xff] }
  0x48   :  { %1167 = vmatprep.subr.bf16.mxu0 %v1348_v12  ;;  %v1363_v27 = vld [vmem:[#allocation5 + $0x88] sm:$0xff]   ;;  %v117_v33 = vpack.c.bf16 %v110_v32, %v103_v31  ;;  %v1367_v34 = vld [vmem:[#allocation5 + $0x80] sm:$0xff]   ;;  %v102_v35 = vld [vmem:[#allocation2] sm:$0xff] }
  0x49   :  { %1188 = vmatpush3.bf16.msra.mxu1 %v1347_v11  ;;  %v109_v36 = vld [vmem:[#allocation2 + $0x38] sm:$0xff]  ;;  %v1368_v38 = vld [vmem:[#allocation5 + $0x178] sm:$0xff]   ;;  %v112_v40 = vld [vmem:[#allocation2 + $0x50] sm:$0xff] }
  0x4a   :  { %1189 = vmatprep.subr.bf16.mxu1 %v1350_v14  ;;  %558 = vmatprep.mubr.bf16.mxu0 %v117_v33  ;;  %v116_v37 = vpack.c.bf16 %v109_v36, %v102_v35  ;;  %v105_v39 = vld [vmem:[#allocation2 + $0x18] sm:$0xff]  ;;  %v1369_v42 = vld [vmem:[#allocation5 + $0x138] sm:$0xff]   ;;  %v104_v44 = vld [vmem:[#allocation2 + $0x10] sm:$0xff] }
  0x4b   :  { %1168 = vmatpush3.bf16.msra.mxu0 %v1349_v13  ;;  %v119_v41 = vpack.c.bf16 %v112_v40, %v105_v39  ;;  %v111_v45 = vld [vmem:[#allocation2 + $0x48] sm:$0xff]  ;;  %v1370_v47 = vld [vmem:[#allocation5 + $0x170] sm:$0xff]   ;;  %v1372_v49 = vld [vmem:[#allocation5 + $0x168] sm:$0xff]  }
  0x4c   :  { %1169 = vmatprep.subr.bf16.mxu0 %v1352_v16  ;;  %v118_v46 = vpack.c.bf16 %v111_v45, %v104_v44  ;;  %v1371_v48 = vld [vmem:[#allocation5 + $0x130] sm:$0xff]   ;;  %v1373_v50 = vld [vmem:[#allocation5 + $0x128] sm:$0xff]   ;;  %v1374_v51 = vld [vmem:[#allocation5 + $0x160] sm:$0xff]  }
  0x4d   :  { %1190 = vmatpush3.bf16.msra.mxu1 %v1351_v15  ;;  %599 = vmatprep.mubr.bf16.mxu1 %v119_v41  ;;  %v1375_v52 = vld [vmem:[#allocation5 + $0x120] sm:$0xff]   ;;  %v1376_v53 = vld [vmem:[#allocation5 + $0x158] sm:$0xff]   ;;  %v1378_v55 = vld [vmem:[#allocation5 + $0x150] sm:$0xff]  }
  0x4e   :  { %1191 = vmatprep.subr.bf16.mxu1 %v1354_v18  ;;  %v1377_v54 = vld [vmem:[#allocation5 + $0x118] sm:$0xff]   ;;  %v1384_v56 = vld [vmem:[#allocation5 + $0x180] sm:$0xff]   ;;  %v1379_v58 = vld [vmem:[#allocation5 + $0x110] sm:$0xff]  }
  0x4f   :  { %1170 = vmatpush3.bf16.msra.mxu0 %v1353_v17  ;;  %v107_v57 = vld [vmem:[#allocation2 + $0x28] sm:$0xff]  ;;  %v1380_v59 = vld [vmem:[#allocation5 + $0x148] sm:$0xff]   ;;  %v114_v60 = vld [vmem:[#allocation2 + $0x60] sm:$0xff] }
  0x50   :  { %1171 = vmatprep.subr.bf16.mxu0 %v1356_v20  ;;  %v121_v61 = vpack.c.bf16 %v114_v60, %v107_v57  ;;  %v108_v62 = vld [vmem:[#allocation2 + $0x30] sm:$0xff]  ;;  %v115_v63 = vld [vmem:[#allocation2 + $0x68] sm:$0xff]  ;;  %v1381_v1 = vld [vmem:[#allocation5 + $0x108] sm:$0xff]  }
  0x51   :  { %1192 = vmatpush3.bf16.msra.mxu1 %v1355_v19  ;;  %v122_v0 = vpack.c.bf16 %v115_v63, %v108_v62  ;;  %v1382_v2 = vld [vmem:[#allocation5 + $0x140] sm:$0xff]   ;;  %v106_v4 = vld [vmem:[#allocation2 + $0x20] sm:$0xff]  ;;  %v113_v5 = vld [vmem:[#allocation2 + $0x58] sm:$0xff] }
  0x52   :  { %1193 = vmatprep.subr.bf16.mxu1 %v1358_v22  ;;  %v1383_v3 = vld [vmem:[#allocation5 + $0x100] sm:$0xff]   ;;  %v120_v6 = vpack.c.bf16 %v113_v5, %v106_v4  ;;  %v1386_v8 = vld [vmem:[#allocation7 + $0x30] sm:$0xff]   ;;  %v1387_v9 = vld [vmem:[#allocation7 + $0x28] sm:$0xff]  }
  0x53   :  { %1172 = vmatpush3.bf16.msra.mxu0 %v1357_v21  ;;  %v1385_v7 = vld [vmem:[#allocation7 + $0x38] sm:$0xff]   ;;  %v1388_v10 = vld [vmem:[#allocation7 + $0x20] sm:$0xff]   ;;  %v1390_v12 = vld [vmem:[#allocation7 + $0x10] sm:$0xff]  }
  0x54   :  { %1173 = vmatprep.subr.bf16.mxu0 %v1360_v24  ;;  %v1389_v11 = vld [vmem:[#allocation7 + $0x18] sm:$0xff]   ;;  %v1391_v13 = vld [vmem:[#allocation7 + $0x8] sm:$0xff]   ;;  %v1392_v14 = vld [vmem:[#allocation7] sm:$0xff]  }
  0x55   :  { %1194 = vmatpush3.bf16.msra.mxu1 %v1359_v23  ;;  %v1393_v15 = vld [vmem:[#allocation8 + $0x38] sm:$0xff]   ;;  %v1394_v16 = vld [vmem:[#allocation8 + $0x30] sm:$0xff]   ;;  %v1395_v17 = vld [vmem:[#allocation8 + $0x28] sm:$0xff]  }
  0x56   :  { %1195 = vmatprep.subr.bf16.mxu1 %v1362_v26  ;;  %v1396_v18 = vld [vmem:[#allocation8 + $0x20] sm:$0xff]   ;;  %v1397_v19 = vld [vmem:[#allocation8 + $0x18] sm:$0xff]   ;;  %v1083_v32 = vld [vmem:[%s1690_s2] ss:$0 sm:$0xff] }
  0x57   :  { %1174 = vmatpush3.bf16.msra.mxu0 %v1361_v25  ;;  %v1400_v57 = vld [vmem:[#allocation8] sm:$0xff]   ;;  %v1403_v60 = vld [vmem:[#allocation10 + $0x28] sm:$0xff]   ;;  %v1405_v62 = vld [vmem:[#allocation10 + $0x18] sm:$0xff]  }
  0x58   :  { %1175 = vmatprep.subr.bf16.mxu0 %v1364_v28  ;;  %v1134_v63 = vld [vmem:[%s1692_s4] ss:$0 sm:$0xff] }
  0x59   :  { %1196 = vmatpush3.bf16.msra.mxu1 %v1363_v27 }
  0x5a   :  { %1197 = vmatprep.subr.bf16.mxu1 %v1366_v30 }
  0x5b   :  { %1176 = vmatpush3.bf16.msra.mxu0 %v1365_v29 }
  0x5c   :  { %1205 = vmatprep.subr.bf16.mxu0 %v1368_v38 }
  0x5d   :  { %1198 = vmatpush3.bf16.msra.mxu1 %v1367_v34 }
  0x5e   :  { %1256 = vmatprep.subr.bf16.mxu1 %v1554_v43  ;;  %559 = vmatmul.mubr.bf16.vlgmr.msra.gmra.mxu0 %v116_v37 }
  0x5f   :  { %1206 = vmatpush3.bf16.msra.mxu0 %v1369_v42  ;;  %640 = vmatprep.mubr.bf16.mxu0 %v121_v61  ;;  %v1404_v61 = vld [vmem:[#allocation10 + $0x20] sm:$0xff]  }
  0x60   :  { %600 = vmatmul.mubr.bf16.vlgmr.msra.gmra.mxu1 %v118_v46  ;;  %1207 = vmatprep.subr.bf16.mxu0 %v1370_v47 }
  0x61   :  { %1258 = vmatprep.mubr.msk.bf16.mxu1 %vm1555_vm0, %v1554_v43  ;;  %1257 = vmatpush3.bf16.msra.mxu1 %v1384_v56  ;;  %v1399_v56 = vld [vmem:[#allocation8 + $0x8] sm:$0xff]  }
  0x62   :  { %1262 = vmatprep.subr.bf16.mxu1 %v1554_v43 }
  0x63   :  { %1208 = vmatpush3.bf16.msra.mxu0 %v1371_v48 }
  0x64   :  { %1209 = vmatprep.subr.bf16.mxu0 %v1372_v49 }
  0x67   :  { %1210 = vmatpush3.bf16.msra.mxu0 %v1373_v50 }
  0x68   :  { %1211 = vmatprep.subr.bf16.mxu0 %v1374_v51  ;;  %1259 = vmatmul.mubr.msk.bf16.vlgmr.msra.gmra.mxu1 %vm522_vm1, %v122_v0 }
  0x69   :  { %1278 = vmatprep.mubr.msk.bf16.mxu1 %vm1555_vm0, %v1554_v43  ;;  %1263 = vmatpush3.bf16.msra.mxu1 %v1385_v7 }
  0x6a   :  { %1264 = vmatprep.subr.bf16.mxu1 %v1554_v43 }
  0x6b   :  { %1212 = vmatpush3.bf16.msra.mxu0 %v1375_v52 }
  0x6c   :  { %1213 = vmatprep.subr.bf16.mxu0 %v1376_v53 }
  0x6d   :  { %1265 = vmatpush3.bf16.msra.mxu1 %v1386_v8 }
  0x6e   :  { %1266 = vmatprep.subr.bf16.mxu1 %v1554_v43 }
  0x6f   :  { %1214 = vmatpush3.bf16.msra.mxu0 %v1377_v54 }
  0x70   :  { %1215 = vmatprep.subr.bf16.mxu0 %v1378_v55  ;;  %v1398_v55 = vld [vmem:[#allocation8 + $0x10] sm:$0xff]  }
  0x71   :  { %1267 = vmatpush3.bf16.msra.mxu1 %v1387_v9  ;;  %v1406_v9 = vld [vmem:[#allocation10 + $0x10] sm:$0xff]  }
  0x72   :  { %1268 = vmatprep.subr.bf16.mxu1 %v1554_v43 }
  0x73   :  { %1216 = vmatpush3.bf16.msra.mxu0 %v1379_v58  ;;  %v1401_v58 = vld [vmem:[#allocation10 + $0x38] sm:$0xff]  }
  0x74   :  { %1217 = vmatprep.subr.bf16.mxu0 %v1380_v59  ;;  %v1402_v59 = vld [vmem:[#allocation10 + $0x30] sm:$0xff]  }
  0x75   :  { %1269 = vmatpush3.bf16.msra.mxu1 %v1388_v10  ;;  %v1407_v10 = vld [vmem:[#allocation10 + $0x8] sm:$0xff]  }
  0x76   :  { %1270 = vmatprep.subr.bf16.mxu1 %v1554_v43 }
  0x77   :  { %1218 = vmatpush3.bf16.msra.mxu0 %v1381_v1 }
  0x78   :  { %1219 = vmatprep.subr.bf16.mxu0 %v1382_v2 }
  0x79   :  { %1271 = vmatpush3.bf16.msra.mxu1 %v1389_v11  ;;  %v1408_v11 = vld [vmem:[#allocation10] sm:$0xff]  }
  0x7a   :  { %1272 = vmatprep.subr.bf16.mxu1 %v1554_v43 }
  0x7b   :  { %1220 = vmatpush3.bf16.msra.mxu0 %v1383_v3 }
  0x7c   :  { %1282 = vmatprep.subr.bf16.mxu0 %v1554_v43 }
  0x7d   :  { %1273 = vmatpush3.bf16.msra.mxu1 %v1390_v12  ;;  %v1143_v12 = vld [vmem:[%s1694_s6] ss:$0 sm:$0xff]  ;;  %s1556_s6 = smov [#allocation11]  }
  0x7e   :  { %641 = vmatmul.mubr.bf16.vlgmr.msra.gmra.mxu0 %v120_v6  ;;  %1274 = vmatprep.subr.bf16.mxu1 %v1554_v43 }
  0x7f   :  { %1298 = vmatprep.mubr.msk.bf16.mxu0 %vm1555_vm0, %v1554_v43  ;;  %1283 = vmatpush3.bf16.msra.mxu0 %v1393_v15 }
  0x80   :  { %1284 = vmatprep.subr.bf16.mxu0 %v1554_v43 }
  0x81   :  { %1275 = vmatpush3.bf16.msra.mxu1 %v1391_v13 }
  0x82   :  { %1276 = vmatprep.subr.bf16.mxu1 %v1554_v43 }
  0x83   :  { %1285 = vmatpush3.bf16.msra.mxu0 %v1394_v16 }
  0x84   :  { %1286 = vmatprep.subr.bf16.mxu0 %v1554_v43 }
  0x85   :  { %1277 = vmatpush3.bf16.msra.mxu1 %v1392_v14 }
  0x86   :  { %1302 = vmatprep.subr.bf16.mxu1 %v1554_v43 }
  0x87   :  { %1287 = vmatpush3.bf16.msra.mxu0 %v1395_v17 }
  0x88   :  { %1288 = vmatprep.subr.bf16.mxu0 %v1554_v43 }
  0x8b   :  { %1289 = vmatpush3.bf16.msra.mxu0 %v1396_v18 }
  0x8c   :  { %1290 = vmatprep.subr.bf16.mxu0 %v1554_v43 }
  0x8f   :  { %1291 = vmatpush3.bf16.msra.mxu0 %v1397_v19 }
  0x90   :  { %1292 = vmatprep.subr.bf16.mxu0 %v1554_v43 }
  0x93   :  { %1293 = vmatpush3.bf16.msra.mxu0 %v1398_v55 }
  0x94   :  { %1294 = vmatprep.subr.bf16.mxu0 %v1554_v43 }
  0x97   :  { %1295 = vmatpush3.bf16.msra.mxu0 %v1399_v56 }
  0x98   :  { %1296 = vmatprep.subr.bf16.mxu0 %v1554_v43 }
  0x9b   :  { %1297 = vmatpush3.bf16.msra.mxu0 %v1400_v57 }
 0x11e   :  { %v1177_v23 = vpop.f32.mrf.mxu0 }
 0x120   :  { %v1199_v20 = vpop.f32.mrf.mxu1  ;;  %v1178_v25 = vpop.f32.mrf.mxu0 }
 0x121   :  { %v1179_v31 = vadd.f32 %v1178_v25, %v1177_v23 }
 0x122   :  { %v1200_v21 = vpop.f32.mrf.mxu1  ;;  %v1180_v28 = vpop.f32.mrf.mxu0 }
 0x123   :  { %v561_v34 = vadd.f32 %v1179_v31, %v1083_v32  ;;  %v1201_v35 = vadd.f32 %v1200_v21, %v1199_v20 }
 0x124   :  { %v1202_v22 = vpop.f32.mrf.mxu1  ;;  %v1181_v33 = vpop.f32.mrf.mxu0 }
 0x125   :  { %v1182_v36 = vadd.f32 %v1181_v33, %v1180_v28  ;;  %v602_v39 = vadd.f32 %v1201_v35, %v561_v34 }
 0x126   :  { %v1203_v24 = vpop.f32.mrf.mxu1 }
 0x127   :  { %v564_v40 = vadd.f32 %v1182_v36, %v1083_v32  ;;  %v1204_v41 = vadd.f32 %v1203_v24, %v1202_v22  ;;  %v1035_v22 = vlaneseq }
 0x128   :  { %v683_v26 = vpop.f32.mrf.mxu1 }
 0x129   :  { %v605_v47 = vadd.f32 %v1204_v41, %v564_v40  ;;  %v1036_v23 = vand.u32 127, %v1035_v22 }
 0x12a   :  { %v1260_v27 = vpop.f32.mrf.mxu1 }
 0x12b   :  { %vm1037_vm2 = vcmp.lt.s32.totalorder %v1036_v23, 10 }
 0x12c   :  { %v686_v29 = vpop.f32.mrf.mxu1 }
 0x12e   :  { %v1261_v30 = vpop.f32.mrf.mxu1 }
 0x13e   :  { %v1221_v37 = vpop.f32.mrf.mxu0 }
 0x140   :  { %v1222_v38 = vpop.f32.mrf.mxu0 }
 0x141   :  { %v1223_v42 = vadd.f32 %v1222_v38, %v1221_v37 }
 0x142   :  { %v1224_v44 = vpop.f32.mrf.mxu0 }
 0x143   :  { %v643_v45 = vadd.f32 %v1223_v42, %v602_v39 }
 0x144   :  { %v1225_v46 = vpop.f32.mrf.mxu0 }
 0x145   :  { %v1226_v48 = vadd.f32 %v1225_v46, %v1224_v44  ;;  %v684_v49 = vadd.f32 %v683_v26, %v643_v45 }
 0x147   :  { %v646_v50 = vadd.f32 %v1226_v48, %v605_v47  ;;  %v690_v52 = vmax.f32 %v684_v49, 0.0 }
 0x149   :  { %v687_v51 = vadd.f32 %v686_v29, %v646_v50 }
 0x14b   :  { %v691_v53 = vmax.f32 %v687_v51, 0.0 }
 0x14d   :  { %v692_v54 = vpack.c.bf16 %v691_v53, %v690_v52 }
 0x14f   :  { %1279 = vmatmul.mubr.bf16.vlgmr.msra.gmra.mxu1 %v692_v54 }
 0x150   :  { %1318 = vmatprep.mubr.msk.bf16.mxu1 %vm1555_vm0, %v1554_v43  ;;  %1303 = vmatpush3.bf16.msra.mxu1 %v1401_v58 }
 0x151   :  { %1304 = vmatprep.subr.bf16.mxu1 %v1554_v43 }
 0x154   :  { %1305 = vmatpush3.bf16.msra.mxu1 %v1402_v59 }
 0x155   :  { %1306 = vmatprep.subr.bf16.mxu1 %v1554_v43 }
 0x158   :  { %1307 = vmatpush3.bf16.msra.mxu1 %v1403_v60 }
 0x159   :  { %1308 = vmatprep.subr.bf16.mxu1 %v1554_v43 }
 0x15c   :  { %1309 = vmatpush3.bf16.msra.mxu1 %v1404_v61 }
 0x15d   :  { %1310 = vmatprep.subr.bf16.mxu1 %v1554_v43 }
 0x160   :  { %1311 = vmatpush3.bf16.msra.mxu1 %v1405_v62 }
 0x161   :  { %1312 = vmatprep.subr.bf16.mxu1 %v1554_v43 }
 0x164   :  { %1313 = vmatpush3.bf16.msra.mxu1 %v1406_v9 }
 0x165   :  { %1314 = vmatprep.subr.bf16.mxu1 %v1554_v43 }
 0x168   :  { %1315 = vmatpush3.bf16.msra.mxu1 %v1407_v10 }
 0x169   :  { %1316 = vmatprep.subr.bf16.mxu1 %v1554_v43  ;;  %v1152_v43 = vld [vmem:[%s1696_s8] ss:$0 sm:$0xff]  ;;  %s1069_s8 = sshll.u32 %s1556_s6, 4  ;;  %s1070_s8 = int_to_ptr.vmem [resolvable:$true] %s1069_s8 }
 0x16a   :  { %s1517_s18 = scalar_lea.vmem %s1070_s8, 256  ;;  %p1522_p12 = scmp.lt.s32.totalorder %s1070_s8, %s1070_s8 }
 0x16b   :  { %p1518_p11 = scmp.ne.s32.totalorder %s1070_s8, %s1517_s18  ;;  %p1523_p13 = scmp.lt.s32.totalorder %s1517_s18, %s1517_s18 }
 0x16c   :  { %1317 = vmatpush3.bf16.msra.mxu1 %v1408_v11 }
 0x16d   :  { %p1524_p0 = por %p1523_p13, %p1522_p12 }
 0x16f   :  { %p1525_p1 = pnand %p1524_p0, %p1518_p11 }
 0x20f   :  { %v798_v0 = vpop.f32.mrf.mxu1 }
 0x210   :  { %v799_v2 = vadd.f32 %v1134_v63, %v798_v0 }
 0x211   :  { %v1280_v1 = vpop.f32.mrf.mxu1 }
 0x212   :  { %v805_v6 = vmax.f32 %v799_v2, 0.0 }
 0x213   :  { %v801_v3 = vpop.f32.mrf.mxu1 }
 0x214   :  { %v802_v4 = vadd.f32 %v1134_v63, %v801_v3 }
 0x215   :  { %v1281_v5 = vpop.f32.mrf.mxu1 }
 0x216   :  { %v806_v7 = vmax.f32 %v802_v4, 0.0 }
 0x218   :  { %v807_v8 = vpack.c.bf16 %v806_v7, %v805_v6 }
 0x21a   :  { %1299 = vmatmul.mubr.bf16.vlgmr.msra.gmra.mxu0 %v807_v8 }
 0x2da   :  { %v913_v13 = vpop.f32.mrf.mxu0 }
 0x2db   :  { %v914_v15 = vadd.f32 %v1143_v12, %v913_v13 }
 0x2dc   :  { %v1300_v14 = vpop.f32.mrf.mxu0 }
 0x2dd   :  { %v920_v19 = vmax.f32 %v914_v15, 0.0 }
 0x2de   :  { %v916_v16 = vpop.f32.mrf.mxu0 }
 0x2df   :  { %v917_v17 = vadd.f32 %v1143_v12, %v916_v16 }
 0x2e0   :  { %v1301_v18 = vpop.f32.mrf.mxu0 }
 0x2e1   :  { %v921_v20 = vmax.f32 %v917_v17, 0.0 }
 0x2e3   :  { %v922_v21 = vpack.c.bf16 %v921_v20, %v920_v19 }
 0x2e5   :  { %1319 = vmatmul.mubr.bf16.vlgmr.msra.gmra.mxu1 %v922_v21 }
 0x3a5   :  { %v1028_v24 = vpop.f32.mrf.mxu1 }
 0x3a6   :  { %v1029_v25 = vadd.f32 %v1152_v43, %v1028_v24 }
 0x3a7   :  { %v1320_v26 = vpop.f32.mrf.mxu1 }
 0x3a8   :  { %v1038_v27 = vsel %vm1037_vm2, %v1029_v25, -inf }
 0x3a9   :  { %1040 = vmax.xlane.f32.xlu0 %v1038_v27  ;;  %v1031_v28 = vpop.f32.mrf.mxu1 }
 0x3aa   :  { %v1032_v29 = vadd.f32 %v1152_v43, %v1031_v28 }
 0x3ab   :  { %v1321_v30 = vpop.f32.mrf.mxu1 }
 0x3ac   :  { %v1039_v31 = vsel %vm1037_vm2, %v1032_v29, -inf }
 0x3ad   :  { %1042 = vmax.xlane.f32.xlu0 %v1039_v31 }
 0x432   :  { %v1041_v32 = vpop.xlane.xlu0 %1040 }
 0x433   :  { %v1044_v33 = vsub.f32 %v1038_v27, %v1041_v32 }
 0x435   :  { %v1046_v34 = vmul.f32 1.442695, %v1044_v33 }
 0x436   :  { %v1043_v35 = vpop.xlane.xlu0 %1042 }
 0x437   :  { %v1045_v36 = vsub.f32 %v1039_v31, %v1043_v35  ;;  %1409 = vpow2.f32 %v1046_v34 }
 0x439   :  { %v1048_v37 = vmul.f32 1.442695, %v1045_v36 }
 0x43b   :  { %1411 = vpow2.f32 %v1048_v37 }
 0x444   :  { %v1410_v38 = vpop.eup %1409 }
 0x445   :  { %1050 = vadd.xlane.f32.xlu1 %v1410_v38 }
 0x448   :  { %v1412_v39 = vpop.eup %1411 }
 0x449   :  { %1052 = vadd.xlane.f32.xlu1 %v1412_v39 }
 0x4ce   :  { %v1051_v40 = vpop.xlane.xlu1 %1050 }
 0x4cf   :  { %1413 = vlog2.f32 %v1051_v40 }
 0x4d2   :  { %v1053_v41 = vpop.xlane.xlu1 %1052 }
 0x4d3   :  { %1415 = vlog2.f32 %v1053_v41 }
 0x4dc   :  { %v1414_v42 = vpop.eup %1413 }
 0x4dd   :  { %v1055_v44 = vmul.f32 0.6931472, %v1414_v42 }
 0x4df   :  { %v1058_v45 = vsub.f32 %v1044_v33, %v1055_v44 }
 0x4e0   :  { %v1416_v46 = vpop.eup %1415 }
 0x4e1   :  { %v1060_v47 = vsel %vm1037_vm2, %v1058_v45, 0.0  ;;  %v1057_v48 = vmul.f32 0.6931472, %v1416_v46 }
 0x4e2   :  { %1062 = vst [vmem:[#allocation11] sm:$0xff] %v1060_v47 }
 0x4e3   :  { %v1059_v49 = vsub.f32 %v1045_v36, %v1057_v48 }
 0x4e5   :  { %v1061_v50 = vsel %vm1037_vm2, %v1059_v49, 0.0 }
 0x4e6   :  { %1063 = vst [vmem:[#allocation11 + $0x8] sm:$0xff] %v1061_v50 }
 0x4e7   :  { %1528 = shalt.err (!%p1525_p1)
}
 0x4e8   :  { %s1557_s19 = smov 128   ;;  %s1558_s20 = smov 8  }
 0x4e9   :  { %1075 = dma.vmem_to_hbm [thread:$0]  %s1070_s8, 256, %s1697_s9, [#allocation4], %s1557_s19, %s1557_s19, %s1558_s20  }
 0x4ea   :  { %1543 = dma.done.wait [#allocation4], 256  }
 0x4eb   :  { %1544 = vsyncadd [#allocation4], 4294967040 }
 0x4ec   :  { %1079 = vsyncpa [#allocation3], 1 }
 0x4ed   :  { %1080 = vsyncpa [#allocation6], 1 }
 0x4ee   :  { %1081 = vsyncpa [#allocation9], 1 }
 0x4ef   :  { %1082 = vsyncpa [#allocation4], 1 }

</bundles_post_ra>
